<compile_context>
chip_gen: v7x
topology: tpu7x:2x2x1
jax: 0.10.0
libtpu: 0.0.40
codegen_flags: <defaults>
</compile_context>

<pallas_src>
import functools

import jax
import jax.numpy as jnp
from jax import lax
from jax.experimental import pallas as pl
from jax.experimental.pallas import tpu as pltpu


def token_encoding_kernel(x_ref, w_ref, b_ref, o_ref, acc_ref, *, H, W):
    """One (batch element, d_model tile) block.

    x_ref:   (W*H, C)        spatial-flattened, channels-last
    w_ref:   (3, C, Td)      per-tap matmul weights for this d_model tile
    b_ref:   (1, Td)         f32 bias for this tile
    o_ref:   ((W+2)*H, Td)   output block (out_dtype)
    acc_ref: ((W+2)*H, Td)   f32 VMEM scratch accumulator
    """
    wh = W * H
    m = (W + 2) * H
    f32 = jnp.float32

    x = x_ref[...]                      # (W*H, C)
    w0 = w_ref[0]                       # (C, Td)   conv tap k = 0
    w1 = w_ref[1]                       # (C, Td)   conv tap k = 1
    w2 = w_ref[2]                       # (C, Td)   conv tap k = 2

    # Every output row receives exactly three tap contributions below, so
    # initializing the accumulator with the broadcast bias doubles as zero-init.
    acc_ref[...] = jnp.broadcast_to(b_ref[...], acc_ref.shape)

    # Interior taps: out[j] += W_k . x[(j + k - 2) mod W].  The unwrapped parts
    # are three full-size accumulating dots at row offsets 0 / H / 2H (wrapper
    # guarantees H is sublane-aligned, so these are pure VPU adds — no relayout).
    acc_ref[0:wh, :] += jnp.dot(x, w2, preferred_element_type=f32)
    acc_ref[H:H + wh, :] += jnp.dot(x, w1, preferred_element_type=f32)
    acc_ref[2 * H:2 * H + wh, :] += jnp.dot(x, w0, preferred_element_type=f32)

    # Circular-wrap corrections: four tiny edge dots (<= 2H rows each), instead
    # of materializing a circularly padded copy of the whole x block.
    acc_ref[0:2 * H, :] += jnp.dot(x[wh - 2 * H:wh], w0, preferred_element_type=f32)
    acc_ref[0:H, :] += jnp.dot(x[wh - H:wh], w1, preferred_element_type=f32)
    acc_ref[wh:m, :] += jnp.dot(x[0:2 * H], w2, preferred_element_type=f32)
    acc_ref[wh + H:m, :] += jnp.dot(x[0:H], w1, preferred_element_type=f32)

    o_ref[...] = acc_ref[...].astype(o_ref.dtype)


def token_encoding(x, weight, bias, *, compute_dtype=None, out_dtype=None,
                   d_block=None, vmem_limit_bytes=None):
    """x: (B, S1, S2, c_in); weight: (d_model, c_in, 1, 3) [PyTorch OIHW]; bias: (d_model,).

    Returns (B, S1+2, S2, d_model), matching the PyTorch module's forward.

    compute_dtype: optional cast of x / conv weights (jnp.bfloat16 recommended on
      v5e/v6e); the dot still accumulates in f32.
    out_dtype: output dtype (default: x.dtype). The output is the dominant HBM
      stream, so bf16 out halves the roofline-binding traffic on all generations.
    d_block: d_model tile width (multiple of 128). More than one tile gives a
      second "parallel" grid axis (keeps both v7x TensorCores busy even at B==1)
      and bounds the per-step VMEM footprint.
    """
    B, W, H, C = x.shape
    D = weight.shape[0]
    assert W >= 2, "circular padding of 2 along S1 requires S1 >= 2 (as in PyTorch)"

    LANES = 128
    Dp = -(-D // LANES) * LANES                  # lane-dense output width
    out_dtype = x.dtype if out_dtype is None else out_dtype

    if d_block is None:
        d_block = 256 if Dp % 256 == 0 else 128
    d_block = min(d_block, Dp)
    assert d_block % LANES == 0 and Dp % d_block == 0

    # Sublane alignment for the H-multiple row shifts in the kernel: 8 rows for
    # 4-byte data, 16 for 2-byte. Pad S2 with zero rows if needed (perf fallback;
    # padded rows are cropped after the call). Demo shapes need no padding.
    in_dtype = jnp.dtype(compute_dtype) if compute_dtype is not None else x.dtype
    align = 16 if jnp.dtype(in_dtype).itemsize == 2 else 8
    Hp = -(-H // align) * align
    if Hp != H:
        x = jnp.pad(x, ((0, 0), (0, 0), (0, Hp - H), (0, 0)))
    Mp = (W + 2) * Hp

    # Free metadata reshape (collapses adjacent contiguous dims): no HBM copy,
    # and no circular pre-pad of x in HBM.
    x2d = x.reshape(B, W * Hp, C)
    if compute_dtype is not None:
        x2d = x2d.astype(compute_dtype)

    # Fold the NCHW permute / OIHW conv-weight round trip into per-tap matmul
    # weights: w_taps[k, c, d] = weight[d, c, 0, k], zero-padded to Dp lanes.
    w_taps = jnp.transpose(weight[:, :, 0, :], (2, 1, 0))            # (3, C, D)
    w_taps = jnp.pad(w_taps, ((0, 0), (0, 0), (0, Dp - D)))          # (3, C, Dp)
    if compute_dtype is not None:
        w_taps = w_taps.astype(compute_dtype)
    b_pad = jnp.pad(bias, (0, Dp - D)).reshape(1, Dp).astype(jnp.float32)

    kernel = functools.partial(token_encoding_kernel, H=Hp, W=W)

    out2d = pl.pallas_call(
        kernel,
        out_shape=jax.ShapeDtypeStruct((B, Mp, Dp), out_dtype),
        grid=(B, Dp // d_block),
        in_specs=[
            pl.BlockSpec((None, W * Hp, C), lambda b, d: (b, 0, 0)),   # 2D in-kernel
            pl.BlockSpec((3, C, d_block), lambda b, d: (0, 0, d)),
            pl.BlockSpec((1, d_block), lambda b, d: (0, d)),
        ],
        out_specs=pl.BlockSpec((None, Mp, d_block), lambda b, d: (b, 0, d)),
        scratch_shapes=[pltpu.VMEM((Mp, d_block), jnp.float32)],
        compiler_params=pltpu.CompilerParams(
            dimension_semantics=("parallel", "parallel"),
            vmem_limit_bytes=vmem_limit_bytes),
    )(x2d, w_taps, b_pad)

    out = out2d.reshape(B, W + 2, Hp, Dp)
    # These crops are extra HBM passes; both are no-ops when S2 is already
    # aligned and d_model is a multiple of 128 (prefer keeping Dp padded for the
    # downstream consumer when it is not).
    if Hp != H:
        out = out[:, :, :H, :]
    if Dp != D:
        out = out[:, :, :, :D]
    return out


def token_encoding_reference(x, weight, bias):
    """Pure-JAX emulation of the PyTorch forward, for verification."""
    x_nchw = jnp.transpose(x, (0, 3, 2, 1))                          # (B, C, S2, S1)
    x_pad = jnp.concatenate(
        [x_nchw[..., -2:], x_nchw, x_nchw[..., :2]], axis=-1)        # circular pad (0,2)
    y = lax.conv_general_dilated(
        x_pad, weight, window_strides=(1, 1), padding="VALID",
        dimension_numbers=("NCHW", "OIHW", "NCHW"))                  # (B, D, S2, S1+2)
    y = y + bias[None, :, None, None]
    return jnp.transpose(y, (0, 3, 2, 1))                            # (B, S1+2, S2, D)


if __name__ == "__main__":
    B, S1, S2 = 2, 8, 16       # batch, conv axis (S1), pointwise axis (S2)
    C_IN, D_MODEL = 4, 128

    key = jax.random.PRNGKey(0)
    kx, kw, kb = jax.random.split(key, 3)

    # Parameter init mirroring the module's __init__:
    # kaiming_normal_(fan_in, leaky_relu) -> std ~= sqrt(2 / (c_in*1*3))
    fan_in = C_IN * 1 * 3
    w_std = (2.0 / fan_in) ** 0.5
    weight = w_std * jax.random.normal(kw, (D_MODEL, C_IN, 1, 3), dtype=jnp.float32)
    bound = 1.0 / (fan_in ** 0.5)
    bias = jax.random.uniform(kb, (D_MODEL,), minval=-bound, maxval=bound,
                              dtype=jnp.float32)

    x = jax.random.normal(kx, (B, S1, S2, C_IN), dtype=jnp.float32)

    ref = token_encoding_reference(x, weight, bias)

    # f32 path: matches the pure-JAX reference.
    out = jax.block_until_ready(token_encoding(x, weight, bias))
    assert out.shape == (B, S1 + 2, S2, D_MODEL), out.shape
    assert jnp.allclose(out, ref, atol=1e-4, rtol=1e-4), "f32 mismatch vs reference"

    # Recommended deployment path: bf16 compute + bf16 output (halves both the
    # input DMA and the dominant output HBM stream; accumulation stays f32).
    out_bf16 = jax.block_until_ready(
        token_encoding(x, weight, bias,
                       compute_dtype=jnp.bfloat16, out_dtype=jnp.bfloat16))
    assert out_bf16.shape == (B, S1 + 2, S2, D_MODEL), out_bf16.shape
    assert out_bf16.dtype == jnp.bfloat16
    assert jnp.allclose(out_bf16.astype(jnp.float32), ref, atol=1e-1, rtol=1e-1), \
        "bf16 mismatch vs reference"

    print("KERNEL_OK")
</pallas_src>

<mosaic_0001>
module attributes {stable_mosaic.version = 11 : i64} {
  func.func @token_encoding_kernel(%arg0: i32, %arg1: i32, %arg2: memref<1x128x4xf32, #tpu.memory_space<vmem>>, %arg3: memref<3x4x128xf32, #tpu.memory_space<vmem>>, %arg4: memref<1x128xf32, #tpu.memory_space<vmem>>, %arg5: memref<1x160x128xf32, #tpu.memory_space<vmem>>, %arg6: memref<160x128xf32, #tpu.memory_space<vmem>>) attributes {dimension_semantics = [#tpu.dimension_semantics<parallel>, #tpu.dimension_semantics<parallel>], iteration_bounds = array<i64: 2, 1>, scalar_prefetch = 0 : i64, scratch_operands = 1 : i64, tpu.core_type = #tpu.core_type<tc>, window_params = [{transform_indices = @transform_0, window_bounds = array<i64: 1, 128, 4>}, {transform_indices = @transform_1, window_bounds = array<i64: 3, 4, 128>}, {transform_indices = @transform_2, window_bounds = array<i64: 1, 128>}, {transform_indices = @transform_3, window_bounds = array<i64: 1, 160, 128>}]} {
    %c0 = arith.constant 0 : index
    %c0_0 = arith.constant 0 : index
    %c0_1 = arith.constant 0 : index
    %0 = vector.load %arg2[%c0, %c0_0, %c0_1] : memref<1x128x4xf32, #tpu.memory_space<vmem>>, vector<1x128x4xf32>
    %1 = vector.shape_cast %0 : vector<1x128x4xf32> to vector<128x4xf32>
    %c0_2 = arith.constant 0 : index
    %c0_3 = arith.constant 0 : index
    %c0_4 = arith.constant 0 : index
    %2 = vector.load %arg3[%c0_2, %c0_3, %c0_4] : memref<3x4x128xf32, #tpu.memory_space<vmem>>, vector<1x4x128xf32>
    %3 = vector.shape_cast %2 : vector<1x4x128xf32> to vector<4x128xf32>
    %c1 = arith.constant 1 : index
    %c0_5 = arith.constant 0 : index
    %c0_6 = arith.constant 0 : index
    %4 = vector.load %arg3[%c1, %c0_5, %c0_6] : memref<3x4x128xf32, #tpu.memory_space<vmem>>, vector<1x4x128xf32>
    %5 = vector.shape_cast %4 : vector<1x4x128xf32> to vector<4x128xf32>
    %c2 = arith.constant 2 : index
    %c0_7 = arith.constant 0 : index
    %c0_8 = arith.constant 0 : index
    %6 = vector.load %arg3[%c2, %c0_7, %c0_8] : memref<3x4x128xf32, #tpu.memory_space<vmem>>, vector<1x4x128xf32>
    %7 = vector.shape_cast %6 : vector<1x4x128xf32> to vector<4x128xf32>
    %c0_9 = arith.constant 0 : index
    %c0_10 = arith.constant 0 : index
    %8 = vector.load %arg4[%c0_9, %c0_10] : memref<1x128xf32, #tpu.memory_space<vmem>>, vector<1x128xf32>
    %9 = vector.shape_cast %8 : vector<1x128xf32> to vector<1x128xf32>
    %10 = vector.broadcast %9 : vector<1x128xf32> to vector<160x128xf32>
    %c0_11 = arith.constant 0 : index
    %c0_12 = arith.constant 0 : index
    %11 = vector.load %arg6[%c0_11, %c0_12] : memref<160x128xf32, #tpu.memory_space<vmem>>, vector<160x128xf32>
    tpu.vector_store %arg6[%c0_11, %c0_12], %10 {strides = array<i32>} : memref<160x128xf32, #tpu.memory_space<vmem>>, vector<160x128xf32>,
    %c0_13 = arith.constant 0 : index
    %c0_14 = arith.constant 0 : index
    %12 = vector.load %arg6[%c0_13, %c0_14] : memref<160x128xf32, #tpu.memory_space<vmem>>, vector<128x128xf32>
    %cst = arith.constant dense<0.000000e+00> : vector<128x128xf32>
    %13 = tpu.matmul %1, %7, %cst {dimension_numbers = #tpu.dot_dimension_numbers<[1], [0], [0], [1], [0, 0, 1, 1], [], []>} : vector<128x4xf32>, vector<4x128xf32>, vector<128x128xf32> -> vector<128x128xf32>
    %14 = arith.addf %12, %13 : vector<128x128xf32>
    %c0_15 = arith.constant 0 : index
    %c0_16 = arith.constant 0 : index
    %15 = vector.load %arg6[%c0_15, %c0_16] : memref<160x128xf32, #tpu.memory_space<vmem>>, vector<128x128xf32>
    tpu.vector_store %arg6[%c0_15, %c0_16], %14 {strides = array<i32>} : memref<160x128xf32, #tpu.memory_space<vmem>>, vector<128x128xf32>,
    %c16 = arith.constant 16 : index
    %c0_17 = arith.constant 0 : index
    %16 = vector.load %arg6[%c16, %c0_17] : memref<160x128xf32, #tpu.memory_space<vmem>>, vector<128x128xf32>
    %cst_18 = arith.constant dense<0.000000e+00> : vector<128x128xf32>
    %17 = tpu.matmul %1, %5, %cst_18 {dimension_numbers = #tpu.dot_dimension_numbers<[1], [0], [0], [1], [0, 0, 1, 1], [], []>} : vector<128x4xf32>, vector<4x128xf32>, vector<128x128xf32> -> vector<128x128xf32>
    %18 = arith.addf %16, %17 : vector<128x128xf32>
    %c16_19 = arith.constant 16 : index
    %c0_20 = arith.constant 0 : index
    %19 = vector.load %arg6[%c16_19, %c0_20] : memref<160x128xf32, #tpu.memory_space<vmem>>, vector<128x128xf32>
    tpu.vector_store %arg6[%c16_19, %c0_20], %18 {strides = array<i32>} : memref<160x128xf32, #tpu.memory_space<vmem>>, vector<128x128xf32>,
    %c32 = arith.constant 32 : index
    %c0_21 = arith.constant 0 : index
    %20 = vector.load %arg6[%c32, %c0_21] : memref<160x128xf32, #tpu.memory_space<vmem>>, vector<128x128xf32>
    %cst_22 = arith.constant dense<0.000000e+00> : vector<128x128xf32>
    %21 = tpu.matmul %1, %3, %cst_22 {dimension_numbers = #tpu.dot_dimension_numbers<[1], [0], [0], [1], [0, 0, 1, 1], [], []>} : vector<128x4xf32>, vector<4x128xf32>, vector<128x128xf32> -> vector<128x128xf32>
    %22 = arith.addf %20, %21 : vector<128x128xf32>
    %c32_23 = arith.constant 32 : index
    %c0_24 = arith.constant 0 : index
    %23 = vector.load %arg6[%c32_23, %c0_24] : memref<160x128xf32, #tpu.memory_space<vmem>>, vector<128x128xf32>
    tpu.vector_store %arg6[%c32_23, %c0_24], %22 {strides = array<i32>} : memref<160x128xf32, #tpu.memory_space<vmem>>, vector<128x128xf32>,
    %c0_25 = arith.constant 0 : index
    %c0_26 = arith.constant 0 : index
    %24 = vector.load %arg6[%c0_25, %c0_26] : memref<160x128xf32, #tpu.memory_space<vmem>>, vector<32x128xf32>
    %25 = vector.extract_strided_slice %1 {offsets = [96, 0], sizes = [32, 4], strides = [1, 1]} : vector<128x4xf32> to vector<32x4xf32>
    %cst_27 = arith.constant dense<0.000000e+00> : vector<32x128xf32>
    %26 = tpu.matmul %25, %3, %cst_27 {dimension_numbers = #tpu.dot_dimension_numbers<[1], [0], [0], [1], [0, 0, 1, 1], [], []>} : vector<32x4xf32>, vector<4x128xf32>, vector<32x128xf32> -> vector<32x128xf32>
    %27 = arith.addf %24, %26 : vector<32x128xf32>
    %c0_28 = arith.constant 0 : index
    %c0_29 = arith.constant 0 : index
    %28 = vector.load %arg6[%c0_28, %c0_29] : memref<160x128xf32, #tpu.memory_space<vmem>>, vector<32x128xf32>
    tpu.vector_store %arg6[%c0_28, %c0_29], %27 {strides = array<i32>} : memref<160x128xf32, #tpu.memory_space<vmem>>, vector<32x128xf32>,
    %c0_30 = arith.constant 0 : index
    %c0_31 = arith.constant 0 : index
    %29 = vector.load %arg6[%c0_30, %c0_31] : memref<160x128xf32, #tpu.memory_space<vmem>>, vector<16x128xf32>
    %30 = vector.extract_strided_slice %1 {offsets = [112, 0], sizes = [16, 4], strides = [1, 1]} : vector<128x4xf32> to vector<16x4xf32>
    %cst_32 = arith.constant dense<0.000000e+00> : vector<16x128xf32>
    %31 = tpu.matmul %30, %5, %cst_32 {dimension_numbers = #tpu.dot_dimension_numbers<[1], [0], [0], [1], [0, 0, 1, 1], [], []>} : vector<16x4xf32>, vector<4x128xf32>, vector<16x128xf32> -> vector<16x128xf32>
    %32 = arith.addf %29, %31 : vector<16x128xf32>
    %c0_33 = arith.constant 0 : index
    %c0_34 = arith.constant 0 : index
    %33 = vector.load %arg6[%c0_33, %c0_34] : memref<160x128xf32, #tpu.memory_space<vmem>>, vector<16x128xf32>
    tpu.vector_store %arg6[%c0_33, %c0_34], %32 {strides = array<i32>} : memref<160x128xf32, #tpu.memory_space<vmem>>, vector<16x128xf32>,
    %c128 = arith.constant 128 : index
    %c0_35 = arith.constant 0 : index
    %34 = vector.load %arg6[%c128, %c0_35] : memref<160x128xf32, #tpu.memory_space<vmem>>, vector<32x128xf32>
    %35 = vector.extract_strided_slice %1 {offsets = [0, 0], sizes = [32, 4], strides = [1, 1]} : vector<128x4xf32> to vector<32x4xf32>
    %cst_36 = arith.constant dense<0.000000e+00> : vector<32x128xf32>
    %36 = tpu.matmul %35, %7, %cst_36 {dimension_numbers = #tpu.dot_dimension_numbers<[1], [0], [0], [1], [0, 0, 1, 1], [], []>} : vector<32x4xf32>, vector<4x128xf32>, vector<32x128xf32> -> vector<32x128xf32>
    %37 = arith.addf %34, %36 : vector<32x128xf32>
    %c128_37 = arith.constant 128 : index
    %c0_38 = arith.constant 0 : index
    %38 = vector.load %arg6[%c128_37, %c0_38] : memref<160x128xf32, #tpu.memory_space<vmem>>, vector<32x128xf32>
    tpu.vector_store %arg6[%c128_37, %c0_38], %37 {strides = array<i32>} : memref<160x128xf32, #tpu.memory_space<vmem>>, vector<32x128xf32>,
    %c144 = arith.constant 144 : index
    %c0_39 = arith.constant 0 : index
    %39 = vector.load %arg6[%c144, %c0_39] : memref<160x128xf32, #tpu.memory_space<vmem>>, vector<16x128xf32>
    %40 = vector.extract_strided_slice %1 {offsets = [0, 0], sizes = [16, 4], strides = [1, 1]} : vector<128x4xf32> to vector<16x4xf32>
    %cst_40 = arith.constant dense<0.000000e+00> : vector<16x128xf32>
    %41 = tpu.matmul %40, %5, %cst_40 {dimension_numbers = #tpu.dot_dimension_numbers<[1], [0], [0], [1], [0, 0, 1, 1], [], []>} : vector<16x4xf32>, vector<4x128xf32>, vector<16x128xf32> -> vector<16x128xf32>
    %42 = arith.addf %39, %41 : vector<16x128xf32>
    %c144_41 = arith.constant 144 : index
    %c0_42 = arith.constant 0 : index
    %43 = vector.load %arg6[%c144_41, %c0_42] : memref<160x128xf32, #tpu.memory_space<vmem>>, vector<16x128xf32>
    tpu.vector_store %arg6[%c144_41, %c0_42], %42 {strides = array<i32>} : memref<160x128xf32, #tpu.memory_space<vmem>>, vector<16x128xf32>,
    %c0_43 = arith.constant 0 : index
    %c0_44 = arith.constant 0 : index
    %44 = vector.load %arg6[%c0_43, %c0_44] : memref<160x128xf32, #tpu.memory_space<vmem>>, vector<160x128xf32>
    %c0_45 = arith.constant 0 : index
    %c0_46 = arith.constant 0 : index
    %c0_47 = arith.constant 0 : index
    %45 = vector.load %arg5[%c0_45, %c0_46, %c0_47] : memref<1x160x128xf32, #tpu.memory_space<vmem>>, vector<1x160x128xf32>
    %46 = vector.shape_cast %45 : vector<1x160x128xf32> to vector<160x128xf32>
    %47 = vector.shape_cast %44 : vector<160x128xf32> to vector<1x160x128xf32>
    tpu.vector_store %arg5[%c0_45, %c0_46, %c0_47], %47 {strides = array<i32>} : memref<1x160x128xf32, #tpu.memory_space<vmem>>, vector<1x160x128xf32>,
    return
  }
  func.func @transform_0(%arg0: i32, %arg1: i32) -> (i32, i32, i32) {
    %c0_i32 = arith.constant 0 : i32
    %c0_i32_0 = arith.constant 0 : i32
    %c0_i32_1 = arith.constant 0 : i32
    return %arg0, %c0_i32, %c0_i32_0 : i32, i32, i32
  }
  func.func @transform_1(%arg0: i32, %arg1: i32) -> (i32, i32, i32) {
    %c0_i32 = arith.constant 0 : i32
    %c0_i32_0 = arith.constant 0 : i32
    %c0_i32_1 = arith.constant 0 : i32
    return %c0_i32, %c0_i32_0, %arg1 : i32, i32, i32
  }
  func.func @transform_2(%arg0: i32, %arg1: i32) -> (i32, i32) {
    %c0_i32 = arith.constant 0 : i32
    %c0_i32_0 = arith.constant 0 : i32
    return %c0_i32, %arg1 : i32, i32
  }
  func.func @transform_3(%arg0: i32, %arg1: i32) -> (i32, i32, i32) {
    %c0_i32 = arith.constant 0 : i32
    %c0_i32_0 = arith.constant 0 : i32
    return %arg0, %c0_i32, %arg1 : i32, i32, i32
  }
}

</mosaic_0001>

<bundles_post_ra>
// kernel: tpu_custom_call.1
= control target key start
LH: loop header
LB: loop body
LE: loop exit
PB: predicated region body
PF: predicated region fallthrough
CT: control target
= control target key end

     0   :  { %8 = vsyncpa [#allocation4], 0  ;;  %s2206_s0 = inlined_call_operand.vmem [shape: f32[2,128,4], index: 0, kind: input, shape index: {}]   ;;  %s2207_s1 = inlined_call_operand.vmem [shape: f32[3,4,128], index: 1, kind: input, shape index: {}]   ;;  %s2208_s2 = inlined_call_operand.vmem [shape: f32[1,128], index: 2, kind: input, shape index: {}]   ;;  %s2209_s3 = inlined_call_operand.hbm [shape: f32[2,160,128], index: 3, kind: output, shape index: {}]  }
   0x1   :  { %10 = vsyncpa [#allocation4 + $0x1], 0  ;;  %s1888_s12 = smov 0   ;;  %s1890_s13 = smov 0  }
   0x2   :  { %s1892_s14 = smov 0   ;;  %s1894_s15 = smov 0  }
   0x3   :  { %s1896_s16 = smov 0   ;;  %s1898_s17 = smov 0  }
   0x4 LB: > { %s1410_s18 = sadd.s32 4294967295, %s1863_s17   ;;  %s1411_s19 = sadd.s32 4294967294, %s1863_s17   ;;  %s1863_s17 = sphi %s1898_s17, %s16_s17   ;;  %s1859_s16 = sphi %s1896_s16, %s2216_s16   ;;  %s1855_s15 = sphi %s1894_s15, %s2215_s15   ;;  %s1851_s14 = sphi %s1892_s14, %s2214_s14   ;;  %s1847_s13 = sphi %s1890_s13, %s2213_s13   ;;  %s1843_s12 = sphi %s1888_s12, %s2212_s12  }
   0x5   : > { %s28_s20 = sadd.s32 1, %s1859_s16  ;;  %s115_s21 = sadd.s32 1, %s1851_s14 }
   0x6   : > { %p30_p0 = scmp.ge.s32.totalorder %s28_s20, 2  ;;  %p125_p1 = scmp.ne.s32.totalorder %s1851_s14, %s1847_s13 }
   0x7   : > { %p126_p2 = scmp.eq.s32.totalorder %s1410_s18, 1  ;;  %p131_p3 = scmp.ne.s32.totalorder %s1847_s13, %s1843_s12 }
   0x8   : > { %s2218_s20 = smov (%p30_p0, %s28_s20), 0  ;;  %p132_p5 = scmp.eq.s32.totalorder %s1411_s19, 1 }
   0x9   : > { %p1928_p4 = por %p126_p2, %p125_p1  ;;  %s110_s23 = ssub.s32 %s1859_s16, %s2218_s20 }
   0xa   : > { %p1416_p6 = scmp.ge.s32.totalorder %s1863_s17, 1  ;;  %p113_p7 = scmp.eq.s32.totalorder %s110_s23, 0 }
   0xb   : > { %p1935_p8 = por %p132_p5, %p131_p3  ;;  %p171_p9 = scmp.lt.s32.totalorder %s1863_s17, 3 }
   0xc   : > { %s1941_s25 = scalar_select %p113_p7, %s1851_s14, %s115_s21  }
   0xd   : > { %p172_p10 = pnand %p1416_p6, %p171_p9 }
   0xe   : > { %v1946_v0 = vld [vmem:[%s2207_s1 + $0x4] sm:$0xf] (!%p172_p10)  ;;  %vm327_vm0 = vcmask (!%p172_p10), 1043456   ;;  %v1951_v1 = vld [vmem:[%s2207_s1 + $0x8] sm:$0xf] (!%p172_p10)  ;;  %p202_p11 = scmp.lt.s32.totalorder (!%p172_p10), %s1855_s15, 1 }
   0xf   : > { %175 = sbr.rel (%p172_p10) target bundleno = 318 (0x13e), region = 32  ;;  %1586 = vmatprep.subr.msk.mxu0 (!%p172_p10), %vm327_vm0, %v1946_v0  ;;  %1560 = vmatprep.subr.msk.mxu1 (!%p172_p10), %vm327_vm0, %v1951_v1  ;;  %v230_v2 = vld [vmem:[%s2207_s1] sm:$0xf] (!%p172_p10)  ;;  %vm278_vm1 = vcmask (!%p172_p10), 31744   ;;  %s199_s10 = sand.u32 (!%p172_p10), 1, %s1847_s13  }
  0x10   : > { %1587 = vmatpush3.msk.msra.mxu0 (!%p172_p10), %vm327_vm0, %v1946_v0  ;;  %1561 = vmatpush3.msk.msra.mxu1 (!%p172_p10), %vm327_vm0, %v1951_v1  ;;  %s1726_s11 = smul.u32 (!%p172_p10), 160, %s199_s10  ;;  %v2103_v35 = vld [vmem:[%s2208_s2] ss:$0 sm:$0xff] (!%p172_p10)  ;;  %s1865_s4 = smov (!%p172_p10), [#allocation3]  }
  0x11   : > { %1612 = vmatprep.subr.msk.mxu0 (!%p172_p10), %vm327_vm0, %v230_v2  ;;  %1664 = vmatprep.subr.msk.mxu1 (!%p172_p10), %vm327_vm0, %v1946_v0  ;;  %s1727_s23 = smul.u32 (!%p172_p10), 2560, %s1855_s15 }
  0x12   : > { %s2107_s21 = scalar_lea.vmem (!%p172_p10), [#allocation3], %s1726_s11 }
  0x13   : > { %s1311_s26 = sshll.u32 (!%p172_p10), %s2107_s21, 4  ;;  %s2150_s29 = scalar_lea.hbm (!%p172_p10), %s2209_s3, %s1727_s23  ;;  %s2152_s26 = int_to_ptr.vmem [resolvable:$true] %s1311_s26 }
  0x14   : > { %s1785_s30 = scalar_lea.vmem (!%p172_p10), %s2152_s26, 2560 }
  0x15   : > { %p1786_p12 = scmp.ne.s32.totalorder (!%p172_p10), %s2152_s26, %s1785_s30 }
  0x16   : > { %s203_s5 = scalar_select %p202_p11, %s1855_s15, 1 }
  0x17   : > { %s2160_s15 = scalar_lea.sflag [#allocation4], %s199_s10  ;;  %p1787_p13 = pnand %p1786_p12, %p1928_p4 }
  0x18   : > { %s1492_s6 = sshll.u32 %s203_s5, 7  ;;  %s1789_s5 = sshll.u32 %s1865_s4, 4  ;;  %s1790_s5 = int_to_ptr.vmem [resolvable:$false] %s1789_s5 }
  0x19   : > { %s1972_s9 = scalar_lea.vmem %s2206_s0, %s1492_s6  ;;  %p1788_p0 = pneg %p1787_p13 }
  0x1a   : > { %v1975_v3 = vld [vmem:[%s1972_s9] sm:$0xff]  ;;  %v1978_v4 = vld [vmem:[%s1972_s9 + $0x8] sm:$0xff]  ;;  %v1985_v5 = vld [vmem:[%s1972_s9 + $0x10] sm:$0xff]  ;;  %s1791_s6 = scalar_lea.vmem %s1790_s5, 5120  ;;  %p1792_p1 = scmp.lt.s32.totalorder %s2152_s26, %s1790_s5 }
  0x1b   : > { %1562 = vmatprep.mubr.msk.f32.mxu1 %vm278_vm1, %v1975_v3  ;;  %1588 = vmatprep.mubr.msk.f32.mxu0 %vm278_vm1, %v1975_v3  ;;  %v1995_v6 = vld [vmem:[%s1972_s9 + $0x18] sm:$0xff]  ;;  %v218_v7 = vld [vmem:[%s1972_s9 + $0x20] sm:$0xff]  ;;  %v219_v8 = vld [vmem:[%s1972_s9 + $0x28] sm:$0xff]  ;;  %p1793_p2 = scmp.lt.s32.totalorder %s1791_s6, %s1785_s30 }
  0x1c   : > { %1563 = vmatmul.mubr.msk.f32.vlgmr.msra.gmra.mrb[0].mxu1 %vm278_vm1, %v1978_v4  ;;  %1589 = vmatmul.mubr.msk.f32.vlgmr.msra.gmra.mrb[0].mxu0 %vm278_vm1, %v1978_v4  ;;  %v220_v9 = vld [vmem:[%s1972_s9 + $0x30] sm:$0xff]  ;;  %v221_v10 = vld [vmem:[%s1972_s9 + $0x38] sm:$0xff]  ;;  %v222_v11 = vld [vmem:[%s1972_s9 + $0x40] sm:$0xff] }
  0x1d   : > { %1613 = vmatpush3.msk.msra.mxu0 %vm327_vm0, %v230_v2  ;;  %1665 = vmatpush3.msk.msra.mxu1 %vm327_vm0, %v1946_v0  ;;  %v223_v12 = vld [vmem:[%s1972_s9 + $0x48] sm:$0xff]  ;;  %v224_v13 = vld [vmem:[%s1972_s9 + $0x50] sm:$0xff]  ;;  %v225_v14 = vld [vmem:[%s1972_s9 + $0x58] sm:$0xff]  ;;  %p1794_p3 = por %p1793_p2, %p1792_p1 }
  0x1e   : > { %1565 = vmatprep.mubr.msk.f32.mxu1 %vm278_vm1, %v1985_v5  ;;  %1614 = vmatprep.mubr.msk.f32.mxu0 %vm278_vm1, %v1975_v3  ;;  %v226_v15 = vld [vmem:[%s1972_s9 + $0x60] sm:$0xff]  ;;  %v227_v16 = vld [vmem:[%s1972_s9 + $0x68] sm:$0xff]  ;;  %v228_v17 = vld [vmem:[%s1972_s9 + $0x70] sm:$0xff] }
  0x1f   : > { %1638 = vmatprep.subr.msk.mxu0 %vm327_vm0, %v230_v2  ;;  %v229_v18 = vld [vmem:[%s1972_s9 + $0x78] sm:$0xff]  ;;  %p1795_p5 = pnand %p1794_p3, %p1788_p0 }
  0x20   : > { %1566 = vmatmul.mubr.msk.f32.gmra.mrb[2].mxu1 %vm278_vm1, %v1995_v6  ;;  %1615 = vmatmul.mubr.msk.f32.vlgmr.msra.gmra.mrb[2].mxu0 %vm278_vm1, %v1978_v4 }
  0x21   : > { %1639 = vmatpush3.msk.msra.mxu0 %vm327_vm0, %v230_v2  ;;  %1568 = vmatprep.mubr.msk.f32.mxu1 %vm278_vm1, %v218_v7 }
  0x22   : > { %1617 = vmatprep.mubr.msk.f32.mxu0 %vm278_vm1, %v1985_v5  ;;  %1646 = vmatprep.subr.msk.mxu0 %vm327_vm0, %v1946_v0 }
  0x24   : > { %1569 = vmatmul.mubr.msk.f32.gmra.mrb[4].mxu1 %vm278_vm1, %v219_v8  ;;  %1618 = vmatmul.mubr.msk.f32.gmra.mrb[4].mxu0 %vm278_vm1, %v1995_v6 }
  0x25   : > { %1571 = vmatprep.mubr.msk.f32.mxu1 %vm278_vm1, %v220_v9  ;;  %1620 = vmatprep.mubr.msk.f32.mxu0 %vm278_vm1, %v218_v7 }
  0x28   : > { %1572 = vmatmul.mubr.msk.f32.gmra.mrb[6].mxu1 %vm278_vm1, %v221_v10  ;;  %1621 = vmatmul.mubr.msk.f32.gmra.mrb[6].mxu0 %vm278_vm1, %v219_v8 }
  0x29   : > { %1574 = vmatprep.mubr.msk.f32.mxu1 %vm278_vm1, %v222_v11  ;;  %1623 = vmatprep.mubr.msk.f32.mxu0 %vm278_vm1, %v220_v9 }
  0x2c   : > { %1575 = vmatmul.mubr.msk.f32.gmra.mrb[8].mxu1 %vm278_vm1, %v223_v12  ;;  %1624 = vmatmul.mubr.msk.f32.gmra.mrb[8].mxu0 %vm278_vm1, %v221_v10 }
  0x2d   : > { %1577 = vmatprep.mubr.msk.f32.mxu1 %vm278_vm1, %v224_v13  ;;  %1626 = vmatprep.mubr.msk.f32.mxu0 %vm278_vm1, %v222_v11 }
  0x30   : > { %1578 = vmatmul.mubr.msk.f32.gmra.mrb[10].mxu1 %vm278_vm1, %v225_v14  ;;  %1627 = vmatmul.mubr.msk.f32.gmra.mrb[10].mxu0 %vm278_vm1, %v223_v12 }
  0x31   : > { %1580 = vmatprep.mubr.msk.f32.mxu1 %vm278_vm1, %v226_v15  ;;  %1629 = vmatprep.mubr.msk.f32.mxu0 %vm278_vm1, %v224_v13 }
  0x34   : > { %1581 = vmatmul.mubr.msk.f32.gmra.mrb[12].mxu1 %vm278_vm1, %v227_v16  ;;  %1630 = vmatmul.mubr.msk.f32.gmra.mrb[12].mxu0 %vm278_vm1, %v225_v14 }
  0x35   : > { %1583 = vmatprep.mubr.msk.f32.mxu1 %vm278_vm1, %v228_v17  ;;  %1632 = vmatprep.mubr.msk.f32.mxu0 %vm278_vm1, %v226_v15 }
  0x38   : > { %1584 = vmatmul.mubr.msk.f32.gmra.mrb[14].mxu1 %vm278_vm1, %v229_v18  ;;  %1633 = vmatmul.mubr.msk.f32.gmra.mrb[14].mxu0 %vm278_vm1, %v227_v16 }
  0x39   : > { %1591 = vmatprep.mubr.msk.f32.mxu1 %vm278_vm1, %v1985_v5  ;;  %1635 = vmatprep.mubr.msk.f32.mxu0 %vm278_vm1, %v228_v17 }
  0x3c   : > { %1592 = vmatmul.mubr.msk.f32.vlgmr.msra.gmra.mrb[4].mxu1 %vm278_vm1, %v1995_v6  ;;  %1636 = vmatmul.mubr.msk.f32.gmra.mrb[16].mxu0 %vm278_vm1, %v229_v18 }
  0x3d   : > { %1594 = vmatprep.mubr.msk.f32.mxu1 %vm278_vm1, %v218_v7  ;;  %1640 = vmatprep.mubr.msk.f32.mxu0 %vm278_vm1, %v226_v15 }
  0x40   : > { %1595 = vmatmul.mubr.msk.f32.gmra.mrb[6].mxu1 %vm278_vm1, %v219_v8  ;;  %1641 = vmatmul.mubr.msk.f32.vlgmr.msra.gmra.mrb[18].mxu0 %vm278_vm1, %v227_v16 }
  0x41   : > { %1647 = vmatpush3.msk.msra.mxu0 %vm327_vm0, %v1946_v0  ;;  %1597 = vmatprep.mubr.msk.f32.mxu1 %vm278_vm1, %v220_v9 }
  0x42   : > { %1643 = vmatprep.mubr.msk.f32.mxu0 %vm278_vm1, %v228_v17  ;;  %1651 = vmatprep.subr.msk.mxu0 %vm327_vm0, %v1951_v1 }
  0x44   : > { %1598 = vmatmul.mubr.msk.f32.gmra.mrb[8].mxu1 %vm278_vm1, %v221_v10  ;;  %1644 = vmatmul.mubr.msk.f32.gmra.mrb[0].mxu0 %vm278_vm1, %v229_v18 }
  0x45   : > { %1600 = vmatprep.mubr.msk.f32.mxu1 %vm278_vm1, %v222_v11  ;;  %1648 = vmatprep.mubr.msk.f32.mxu0 %vm278_vm1, %v228_v17 }
  0x48   : > { %1601 = vmatmul.mubr.msk.f32.gmra.mrb[10].mxu1 %vm278_vm1, %v223_v12  ;;  %1649 = vmatmul.mubr.msk.f32.vlgmr.msra.gmra.mrb[18].mxu0 %vm278_vm1, %v229_v18 }
  0x49   : > { %1652 = vmatpush3.msk.msra.mxu0 %vm327_vm0, %v1951_v1  ;;  %1603 = vmatprep.mubr.msk.f32.mxu1 %vm278_vm1, %v224_v13 }
  0x4a   : > { %1653 = vmatprep.mubr.msk.f32.mxu0 %vm278_vm1, %v1975_v3  ;;  %1659 = vmatprep.subr.msk.mxu0 %vm327_vm0, %v1946_v0 }
  0x4c   : > { %1604 = vmatmul.mubr.msk.f32.gmra.mrb[12].mxu1 %vm278_vm1, %v225_v14  ;;  %1654 = vmatmul.mubr.msk.f32.vlgmr.msra.gmra.mrb[14].mxu0 %vm278_vm1, %v1978_v4 }
  0x4d   : > { %1660 = vmatpush3.msk.msra.mxu0 %vm327_vm0, %v1946_v0  ;;  %1606 = vmatprep.mubr.msk.f32.mxu1 %vm278_vm1, %v226_v15 }
  0x4e   : > { %1656 = vmatprep.mubr.msk.f32.mxu0 %vm278_vm1, %v1985_v5 }
  0x50   : > { %1607 = vmatmul.mubr.msk.f32.gmra.mrb[14].mxu1 %vm278_vm1, %v227_v16  ;;  %1657 = vmatmul.mubr.msk.f32.gmra.mrb[16].mxu0 %vm278_vm1, %v1995_v6 }
  0x51   : > { %1609 = vmatprep.mubr.msk.f32.mxu1 %vm278_vm1, %v228_v17  ;;  %1661 = vmatprep.mubr.msk.f32.mxu0 %vm278_vm1, %v1975_v3 }
  0x54   : > { %1610 = vmatmul.mubr.msk.f32.gmra.mrb[16].mxu1 %vm278_vm1, %v229_v18 }
  0x58   : > { %1662 = vmatmul.mubr.msk.f32.vlgmr.msra.gmra.mrb[16].mxu0 %vm278_vm1, %v1978_v4 }
  0xef   : > { %v1564_v19 = vpop.f32.mrb[0].mxu1 }
  0xf0   : > { %v397_v20 = vpop.f32.mrb[1].mxu1  ;;  %v477_v58 = vadd.f32 %v1564_v19, %v2103_v35 }
  0xf1   : > { %v476_v60 = vadd.f32 %v2103_v35, %v397_v20 }
  0xf3   : > { %v1616_v21 = vpop.f32.mrb[2].mxu0  ;;  %v1567_v22 = vpop.f32.mrb[2].mxu1 }
  0xf4   : > { %v789_v23 = vpop.f32.mrb[3].mxu0  ;;  %v407_v24 = vpop.f32.mrb[3].mxu1  ;;  %v479_v46 = vadd.f32 %v1567_v22, %v2103_v35 }
  0xf5   : > { %v478_v48 = vadd.f32 %v2103_v35, %v407_v24 }
  0xf7   : > { %v1619_v25 = vpop.f32.mrb[4].mxu0 }
  0xf8   : > { %v799_v26 = vpop.f32.mrb[5].mxu0 }
  0xfb   : > { %v1622_v27 = vpop.f32.mrb[6].mxu0 }
  0xfc   : > { %v809_v28 = vpop.f32.mrb[7].mxu0 }
  0xff   : > { %v1625_v29 = vpop.f32.mrb[8].mxu0 }
 0x100   : > { %v819_v30 = vpop.f32.mrb[9].mxu0 }
 0x103   : > { %v1628_v31 = vpop.f32.mrb[10].mxu0 }
 0x104   : > { %v829_v32 = vpop.f32.mrb[11].mxu0 }
 0x107   : > { %v2093_v33 = vpop.f32.mrb[12].mxu0 }
 0x108   : > { %v2095_v34 = vpop.f32.mrb[13].mxu0 }
 0x10f   : > { %v1593_v36 = vpop.f32.mrb[4].mxu1 }
 0x110   : > { %v1674_v37 = vadd.f32 %v1593_v36, %v2103_v35  ;;  %v603_v38 = vpop.f32.mrb[5].mxu1 }
 0x111   : > { %v1676_v39 = vadd.f32 %v2103_v35, %v603_v38 }
 0x112   : > { %v1675_v40 = vadd.f32 %v1674_v37, %v1616_v21 }
 0x113   : > { %v1677_v41 = vadd.f32 %v1676_v39, %v789_v23  ;;  %v1596_v42 = vpop.f32.mrb[6].mxu1 }
 0x114   : > { %1281 = vst [vmem:[%s2107_s21 + $0x28] sm:$0xff] %v1675_v40  ;;  %v1678_v43 = vadd.f32 %v1596_v42, %v2103_v35  ;;  %v613_v44 = vpop.f32.mrb[7].mxu1 }
 0x115   : > { %1280 = vst [vmem:[%s2107_s21 + $0x20] sm:$0xff] %v1677_v41  ;;  %v1680_v45 = vadd.f32 %v2103_v35, %v613_v44 }
 0x116   : > { %v1679_v47 = vadd.f32 %v1678_v43, %v1619_v25 }
 0x117   : > { %v1681_v49 = vadd.f32 %v1680_v45, %v799_v26  ;;  %v1599_v50 = vpop.f32.mrb[8].mxu1  ;;  %v1645_v51 = vpop.f32.mrb[0].mxu0 }
 0x118   : > { %1283 = vst [vmem:[%s2107_s21 + $0x38] sm:$0xff] %v1679_v47  ;;  %v1682_v52 = vadd.f32 %v1599_v50, %v2103_v35  ;;  %v1671_v53 = vadd.f32 %v1645_v51, %v479_v46  ;;  %v623_v54 = vpop.f32.mrb[9].mxu1  ;;  %v980_v55 = vpop.f32.mrb[1].mxu0 }
 0x119   : > { %1282 = vst [vmem:[%s2107_s21 + $0x30] sm:$0xff] %v1681_v49  ;;  %v1684_v56 = vadd.f32 %v2103_v35, %v623_v54  ;;  %v1673_v57 = vadd.f32 %v980_v55, %v478_v48 }
 0x11a   : > { %v1683_v59 = vadd.f32 %v1682_v52, %v1622_v27  ;;  %1279 = vst [vmem:[%s2107_s21 + $0x18] sm:$0xff] %v1671_v53 }
 0x11b   : > { %v1685_v61 = vadd.f32 %v1684_v56, %v809_v28  ;;  %1278 = vst [vmem:[%s2107_s21 + $0x10] sm:$0xff] %v1673_v57  ;;  %v1602_v62 = vpop.f32.mrb[10].mxu1  ;;  %v1650_v63 = vpop.f32.mrb[18].mxu0 }
 0x11c   : > { %1285 = vst [vmem:[%s2107_s21 + $0x48] sm:$0xff] %v1683_v59  ;;  %v1686_v0 = vadd.f32 %v1602_v62, %v2103_v35  ;;  %v1667_v1 = vadd.f32 %v1650_v63, %v477_v58  ;;  %v633_v2 = vpop.f32.mrb[11].mxu1  ;;  %v1065_v3 = vpop.f32.mrb[19].mxu0 }
 0x11d   : > { %1284 = vst [vmem:[%s2107_s21 + $0x40] sm:$0xff] %v1685_v61  ;;  %v1688_v4 = vadd.f32 %v2103_v35, %v633_v2  ;;  %v1669_v5 = vadd.f32 %v1065_v3, %v476_v60 }
 0x11e   : > { %v1687_v6 = vadd.f32 %v1686_v0, %v1625_v29  ;;  %1277 = vst [vmem:[%s2107_s21 + $0x8] sm:$0xff] %v1667_v1 }
 0x11f   : > { %v1689_v7 = vadd.f32 %v1688_v4, %v819_v30  ;;  %1276 = vst [vmem:[%s2107_s21] sm:$0xff] %v1669_v5  ;;  %v1605_v8 = vpop.f32.mrb[12].mxu1  ;;  %v1655_v9 = vpop.f32.mrb[14].mxu0 }
 0x120   : > { %1287 = vst [vmem:[%s2107_s21 + $0x58] sm:$0xff] %v1687_v6  ;;  %v1690_v10 = vadd.f32 %v1605_v8, %v2103_v35  ;;  %v643_v11 = vpop.f32.mrb[13].mxu1  ;;  %v1148_v12 = vpop.f32.mrb[15].mxu0 }
 0x121   : > { %1286 = vst [vmem:[%s2107_s21 + $0x50] sm:$0xff] %v1689_v7  ;;  %v1692_v13 = vadd.f32 %v2103_v35, %v643_v11 }
 0x122   : > { %v1691_v14 = vadd.f32 %v1690_v10, %v1628_v31 }
 0x123   : > { %v1693_v15 = vadd.f32 %v1692_v13, %v829_v32  ;;  %v1608_v16 = vpop.f32.mrb[14].mxu1 }
 0x124   : > { %1289 = vst [vmem:[%s2107_s21 + $0x68] sm:$0xff] %v1691_v14  ;;  %v1694_v17 = vadd.f32 %v1608_v16, %v2103_v35  ;;  %v653_v18 = vpop.f32.mrb[15].mxu1 }
 0x125   : > { %1288 = vst [vmem:[%s2107_s21 + $0x60] sm:$0xff] %v1693_v15  ;;  %v1696_v19 = vadd.f32 %v2103_v35, %v653_v18 }
 0x126   : > { %v1695_v20 = vadd.f32 %v1694_v17, %v2093_v33 }
 0x127   : > { %v1697_v21 = vadd.f32 %v1696_v19, %v2095_v34  ;;  %v1611_v22 = vpop.f32.mrb[16].mxu1 }
 0x128   : > { %1291 = vst [vmem:[%s2107_s21 + $0x78] sm:$0xff] %v1695_v20  ;;  %v687_v23 = vadd.f32 %v1611_v22, %v2103_v35  ;;  %v663_v24 = vpop.f32.mrb[17].mxu1 }
 0x129   : > { %1290 = vst [vmem:[%s2107_s21 + $0x70] sm:$0xff] %v1697_v21  ;;  %v686_v25 = vadd.f32 %v2103_v35, %v663_v24 }
 0x12a   : > { %v1699_v26 = vadd.f32 %v1655_v9, %v687_v23 }
 0x12b   : > { %v1701_v27 = vadd.f32 %v1148_v12, %v686_v25  ;;  %v1663_v28 = vpop.f32.mrb[16].mxu0 }
 0x12c   : > { %1293 = vst [vmem:[%s2107_s21 + $0x88] sm:$0xff] %v1699_v26  ;;  %v1702_v29 = vadd.f32 %v1663_v28, %v2103_v35  ;;  %v1243_v30 = vpop.f32.mrb[17].mxu0 }
 0x12d   : > { %1292 = vst [vmem:[%s2107_s21 + $0x80] sm:$0xff] %v1701_v27  ;;  %v1703_v31 = vadd.f32 %v2103_v35, %v1243_v30 }
 0x12e   : > { %1295 = vst [vmem:[%s2107_s21 + $0x98] sm:$0xff] %v1702_v29 }
 0x12f   : > { %1294 = vst [vmem:[%s2107_s21 + $0x90] sm:$0xff] %v1703_v31 }
 0x130   : > { %1798 = shalt.err (!%p1795_p5)
}
 0x131   : > { %s1799_s7 = scalar_lea.hbm %s2150_s29, 2560  ;;  %s1803_s10 = scalar_lea.hbm %s2209_s3, 5120 }
 0x132   : > { %p1800_p6 = scmp.ne.s32.totalorder %s2150_s29, %s1799_s7  ;;  %p1804_p10 = scmp.lt.u32.totalorder %s2150_s29, %s2209_s3 }
 0x133   : > { %p1805_p11 = scmp.lt.u32.totalorder %s1803_s10, %s1799_s7  ;;  %p1807_p13 = scmp.lt.u32.totalorder %s1799_s7, %s2150_s29 }
 0x134   : > { %p1801_p7 = pnand %p1800_p6, %p1928_p4 }
 0x135   : > { %p1806_p12 = por %p1805_p11, %p1804_p10 }
 0x136   : > { %p1802_p9 = pneg %p1801_p7 }
 0x137   : > { %p1808_p0 = por %p1807_p13, %p1806_p12 }
 0x139   : > { %p1809_p1 = pnand %p1808_p0, %p1802_p9 }
 0x13b   : > { %1812 = shalt.err (!%p1809_p1)
}
 0x13c   : > { %s1866_s19 = smov 128   ;;  %s1867_s21 = smov 8  }
 0x13d   : > { %1728 = dma.vmem_to_hbm [thread:$0]  (%p1928_p4), %s2152_s26, 2560, %s2150_s29, %s2160_s15, %s1866_s19, %s1866_s19, %s1867_s21  }
 0x13e PF: > { %p1734_p2 = scmp.ge.s32.totalorder %s1863_s17, 2  ;;  %s1326_s23 = sand.u32 1, %s1843_s12  }
 0x13f   : > { %s1327_s27 = scalar_lea.sflag [#allocation4], %s1326_s23 }
 0x140   : > { %p1731_p3 = pnand %p1734_p2, %p1935_p8 }
 0x142   : > { %1838 = dma.done.wait (!%p1731_p3), %s1327_s27, 2560  }
 0x143   : > { %1840 = vsyncadd (!%p1731_p3), %s1327_s27, 4294964736  ;;  %s16_s17 = sadd.s32 1, %s1863_s17   ;;  %s2212_s12 = smov %s1847_s13 }
 0x144   : > { %p13_p5 = scmp.ge.s32.totalorder %s16_s17, 4   ;;  %s2213_s13 = smov %s1851_s14 }
 0x145   : > { %s2214_s14 = smov %s1941_s25  ;;  %s2215_s15 = smov %s1859_s16 }
 0x146   : > { %s2216_s16 = smov %s2218_s20  ;;  %15 = sbr.rel (!%p13_p5) target bundleno = 4 (0x4), region = 75 }
 0x14d   :  { %1332 = vsyncpa [#allocation4], 1 }
 0x14e   :  { %1334 = vsyncpa [#allocation4 + $0x1], 1 }

</bundles_post_ra>
